<compile_context>
chip_gen: v6e
topology: v6e:2x2x1
jax: 0.10.0
libtpu: 0.0.40
codegen_flags: <defaults>
</compile_context>

<pallas_src>
import jax
import jax.numpy as jnp
from jax.experimental import pallas as pl
from jax.experimental.pallas import tpu as pltpu


def _round_up(n, m):
    return ((n + m - 1) // m) * m


def _make_fused_mlp_kernel(n_layers):
    def kernel(x_ref, *refs):
        # refs = (w0, b0, w1, b1, ..., w_{L-1}, b_{L-1}, o_ref)
        o_ref = refs[-1]
        h = x_ref[...].astype(jnp.float32)
        for l in range(n_layers):
            w = refs[2 * l][...]                 # bf16 (K_l, Npad_l), resident in VMEM
            b = refs[2 * l + 1][...]             # f32  (1, Npad_l), broadcasts over rows
            acc = jnp.dot(h.astype(jnp.bfloat16), w,
                          preferred_element_type=jnp.float32)   # MXU bf16, f32 accum
            h = jnp.maximum(acc + b, 0.0)        # f32 epilogue (ReLU after every layer)
        o_ref[...] = h.astype(o_ref.dtype)
    return kernel


def _const_block_spec(shape):
    """Weights/biases: constant index_map -> resident across grid steps.
    Single-buffer them (default pipelining would allocate 2 copies)."""
    idx = lambda i: (0, 0)
    if hasattr(pl, "Buffered"):
        try:
            return pl.BlockSpec(shape, idx, pipeline_mode=pl.Buffered(1))
        except TypeError:
            pass
    return pl.BlockSpec(shape, idx)


def fused_mlp(x, padded_params, *, tb):
    """x: (Bp, in_dim) f32 with Bp % tb == 0 (in_dim unpadded).
    padded_params: list of (W_pad bf16 (K_l, Npad_l), b_pad f32 (1, Npad_l)).
    Returns (Bp, Npad_last) f32."""
    Bp, in_dim = x.shape
    n_layers = len(padded_params)
    out_pad = padded_params[-1][0].shape[1]
    assert Bp % tb == 0
    grid = (Bp // tb,)

    in_specs = [pl.BlockSpec((tb, in_dim), lambda i: (i, 0))]
    flat_inputs = [x]
    weight_bytes = 0
    for (w, b) in padded_params:
        in_specs.append(_const_block_spec(w.shape))
        in_specs.append(_const_block_spec(b.shape))
        flat_inputs.append(w)
        flat_inputs.append(b)
        weight_bytes += w.size * w.dtype.itemsize + b.size * b.dtype.itemsize

    # Fully-resident weight scheme only holds while weights fit comfortably in
    # scoped VMEM (~16 MiB is safe across v5e/v6e/v7x).  See TODO(synk) above.
    assert weight_bytes <= (16 << 20), (
        "resident weights exceed VMEM budget; tiled-K fallback not implemented")

    # Explicit VMEM budget: resident weights + double-buffered activation tiles
    # (f32 in / f32 out) + headroom; floor at the 32 MiB scoped default, cap
    # below v7x's 64 MiB physical VMEM.
    act_bytes = 2 * (tb * in_dim + tb * out_pad) * 4
    vmem_limit = min(max(2 * (weight_bytes + act_bytes), 32 << 20), 60 << 20)

    return pl.pallas_call(
        _make_fused_mlp_kernel(n_layers),
        out_shape=jax.ShapeDtypeStruct((Bp, out_pad), jnp.float32),
        grid=grid,
        in_specs=in_specs,
        out_specs=pl.BlockSpec((tb, out_pad), lambda i: (i, 0)),
        compiler_params=pltpu.CompilerParams(
            dimension_semantics=("parallel",),   # batch tiles independent (megacore/v7x)
            vmem_limit_bytes=vmem_limit),
    )(*flat_inputs)


def _pick_batch_tile(B):
    """Return (padded_batch, tile). Small batches -> one grid step (best on the
    single-TC v5e/v6e); large batches -> 512-row tiles (>=2 steps feeds both
    v7x TensorCores, and 512 is past the per-step-overhead knee)."""
    Bp = _round_up(max(B, 8), 8)
    if Bp <= 1024:
        return Bp, Bp
    tb = 512
    return _round_up(Bp, tb), tb


class BasicMLPPallas:
    """JAX/Pallas equivalent of BasicMLP(input_dim, output_dim, hidden_dims,
    dropout, non_linearities='relu') in eval mode (dropout = identity)."""

    def __init__(self, input_dim, output_dim, hidden_dims=(), key=None):
        if key is None:
            key = jax.random.PRNGKey(0)
        dims = list(hidden_dims) + [output_dim]

        self.input_dim = input_dim
        self.output_dim = output_dim

        # Logical (unpadded) f32 params — stand-in for init_weights(linear).
        self.params = []
        prev = input_dim
        for d in dims:
            key, kw, kb = jax.random.split(key, 3)
            w = jax.random.normal(kw, (prev, d), jnp.float32) * (1.0 / jnp.sqrt(prev))
            b = jax.random.normal(kb, (d,), jnp.float32) * 0.01
            self.params.append((w, b))
            prev = d

        # Padded params for the kernel:
        #  * output/hidden feature dims rounded up to 128 (lane-dense MXU tiles
        #    and unmasked stores); layer-0 K stays at input_dim (x unpadded).
        #  * weights stored bf16 (MXU-native), biases f32 (f32 epilogue).
        # Zero padding is mathematically inert: padded bias = 0 and relu(0) = 0,
        # so padded activation columns are 0 and padded weight rows see zeros.
        self._padded = []
        prev_rows = input_dim
        for (w, b) in self.params:
            d = w.shape[1]
            d_pad = _round_up(d, 128)
            w_pad = jnp.zeros((prev_rows, d_pad), jnp.bfloat16)
            w_pad = w_pad.at[:w.shape[0], :d].set(w.astype(jnp.bfloat16))
            b_pad = jnp.zeros((1, d_pad), jnp.float32).at[0, :d].set(b)
            self._padded.append((w_pad, b_pad))
            prev_rows = d_pad
        self.out_pad = prev_rows

    def __call__(self, x):
        B, in_dim = x.shape
        assert in_dim == self.input_dim

        Bp, tb = _pick_batch_tile(B)
        xf = x.astype(jnp.float32)
        if Bp != B:
            xf = jnp.pad(xf, ((0, Bp - B), (0, 0)))   # no-op when B is 8-aligned

        y_pad = fused_mlp(xf, self._padded, tb=tb)
        return y_pad[:B, :self.output_dim]


if __name__ == "__main__":
    key = jax.random.PRNGKey(0)
    kx, kp = jax.random.split(key)

    batch = 256
    input_dim = 32
    hidden_dims = [64, 48]
    output_dim = 16

    x = jax.random.normal(kx, (batch, input_dim), jnp.float32)

    model = BasicMLPPallas(input_dim, output_dim, hidden_dims, key=kp)
    y = jax.block_until_ready(model(x))
    assert y.shape == (batch, output_dim)

    # Reference 1: same bf16-MXU / f32-accumulate path in plain JAX.
    ref_bf16 = x
    for w, b in model.params:
        ref_bf16 = jnp.maximum(
            jnp.dot(ref_bf16.astype(jnp.bfloat16), w.astype(jnp.bfloat16),
                    preferred_element_type=jnp.float32) + b, 0.0)
    assert jnp.allclose(y, ref_bf16, atol=1e-2, rtol=1e-2)

    # Reference 2: pure f32 math (the PyTorch module's semantics); loose
    # tolerance accounts for the bf16 matmul datapath.
    ref_f32 = x
    for w, b in model.params:
        ref_f32 = jnp.maximum(ref_f32 @ w + b, 0.0)
    assert jnp.allclose(y, ref_f32, atol=0.15, rtol=0.15)

    print("KERNEL_OK")
</pallas_src>

<mosaic_0001>
module attributes {stable_mosaic.version = 11 : i64} {
  func.func @kernel(%arg0: i32, %arg1: memref<256x32xf32, #tpu.memory_space<vmem>>, %arg2: memref<32x128xbf16, #tpu.memory_space<vmem>>, %arg3: memref<1x128xf32, #tpu.memory_space<vmem>>, %arg4: memref<128x128xbf16, #tpu.memory_space<vmem>>, %arg5: memref<1x128xf32, #tpu.memory_space<vmem>>, %arg6: memref<128x128xbf16, #tpu.memory_space<vmem>>, %arg7: memref<1x128xf32, #tpu.memory_space<vmem>>, %arg8: memref<256x128xf32, #tpu.memory_space<vmem>>) attributes {dimension_semantics = [#tpu.dimension_semantics<parallel>], iteration_bounds = array<i64: 1>, scalar_prefetch = 0 : i64, scratch_operands = 0 : i64, tpu.core_type = #tpu.core_type<tc>, window_params = [{transform_indices = @transform_0, window_bounds = array<i64: 256, 32>}, {pipeline_mode = #tpu.pipeline_mode<synchronous>, transform_indices = @transform_1, window_bounds = array<i64: 32, 128>}, {pipeline_mode = #tpu.pipeline_mode<synchronous>, transform_indices = @transform_2, window_bounds = array<i64: 1, 128>}, {pipeline_mode = #tpu.pipeline_mode<synchronous>, transform_indices = @transform_3, window_bounds = array<i64: 128, 128>}, {pipeline_mode = #tpu.pipeline_mode<synchronous>, transform_indices = @transform_4, window_bounds = array<i64: 1, 128>}, {pipeline_mode = #tpu.pipeline_mode<synchronous>, transform_indices = @transform_5, window_bounds = array<i64: 128, 128>}, {pipeline_mode = #tpu.pipeline_mode<synchronous>, transform_indices = @transform_6, window_bounds = array<i64: 1, 128>}, {transform_indices = @transform_7, window_bounds = array<i64: 256, 128>}]} {
    %c0 = arith.constant 0 : index
    %c0_0 = arith.constant 0 : index
    %0 = vector.load %arg1[%c0, %c0_0] : memref<256x32xf32, #tpu.memory_space<vmem>>, vector<256x32xf32>
    %c0_1 = arith.constant 0 : index
    %c0_2 = arith.constant 0 : index
    %1 = vector.load %arg2[%c0_1, %c0_2] : memref<32x128xbf16, #tpu.memory_space<vmem>>, vector<32x128xbf16>
    %c0_3 = arith.constant 0 : index
    %c0_4 = arith.constant 0 : index
    %2 = vector.load %arg3[%c0_3, %c0_4] : memref<1x128xf32, #tpu.memory_space<vmem>>, vector<1x128xf32>
    %3 = arith.truncf %0 : vector<256x32xf32> to vector<256x32xbf16>
    %cst = arith.constant dense<0.000000e+00> : vector<256x128xf32>
    %4 = tpu.matmul %3, %1, %cst {dimension_numbers = #tpu.dot_dimension_numbers<[1], [0], [0], [1], [0, 0, 1, 1], [], []>} : vector<256x32xbf16>, vector<32x128xbf16>, vector<256x128xf32> -> vector<256x128xf32>
    %5 = vector.broadcast %2 : vector<1x128xf32> to vector<256x128xf32>
    %6 = arith.addf %4, %5 : vector<256x128xf32>
    %cst_5 = arith.constant 0.000000e+00 : f32
    %7 = vector.broadcast %cst_5 : f32 to vector<256x128xf32>
    %8 = arith.maximumf %6, %7 : vector<256x128xf32>
    %c0_6 = arith.constant 0 : index
    %c0_7 = arith.constant 0 : index
    %9 = vector.load %arg4[%c0_6, %c0_7] : memref<128x128xbf16, #tpu.memory_space<vmem>>, vector<128x128xbf16>
    %c0_8 = arith.constant 0 : index
    %c0_9 = arith.constant 0 : index
    %10 = vector.load %arg5[%c0_8, %c0_9] : memref<1x128xf32, #tpu.memory_space<vmem>>, vector<1x128xf32>
    %11 = arith.truncf %8 : vector<256x128xf32> to vector<256x128xbf16>
    %cst_10 = arith.constant dense<0.000000e+00> : vector<256x128xf32>
    %12 = tpu.matmul %11, %9, %cst_10 {dimension_numbers = #tpu.dot_dimension_numbers<[1], [0], [0], [1], [0, 0, 1, 1], [], []>} : vector<256x128xbf16>, vector<128x128xbf16>, vector<256x128xf32> -> vector<256x128xf32>
    %13 = vector.broadcast %10 : vector<1x128xf32> to vector<256x128xf32>
    %14 = arith.addf %12, %13 : vector<256x128xf32>
    %cst_11 = arith.constant 0.000000e+00 : f32
    %15 = vector.broadcast %cst_11 : f32 to vector<256x128xf32>
    %16 = arith.maximumf %14, %15 : vector<256x128xf32>
    %c0_12 = arith.constant 0 : index
    %c0_13 = arith.constant 0 : index
    %17 = vector.load %arg6[%c0_12, %c0_13] : memref<128x128xbf16, #tpu.memory_space<vmem>>, vector<128x128xbf16>
    %c0_14 = arith.constant 0 : index
    %c0_15 = arith.constant 0 : index
    %18 = vector.load %arg7[%c0_14, %c0_15] : memref<1x128xf32, #tpu.memory_space<vmem>>, vector<1x128xf32>
    %19 = arith.truncf %16 : vector<256x128xf32> to vector<256x128xbf16>
    %cst_16 = arith.constant dense<0.000000e+00> : vector<256x128xf32>
    %20 = tpu.matmul %19, %17, %cst_16 {dimension_numbers = #tpu.dot_dimension_numbers<[1], [0], [0], [1], [0, 0, 1, 1], [], []>} : vector<256x128xbf16>, vector<128x128xbf16>, vector<256x128xf32> -> vector<256x128xf32>
    %21 = vector.broadcast %18 : vector<1x128xf32> to vector<256x128xf32>
    %22 = arith.addf %20, %21 : vector<256x128xf32>
    %cst_17 = arith.constant 0.000000e+00 : f32
    %23 = vector.broadcast %cst_17 : f32 to vector<256x128xf32>
    %24 = arith.maximumf %22, %23 : vector<256x128xf32>
    %c0_18 = arith.constant 0 : index
    %c0_19 = arith.constant 0 : index
    %25 = vector.load %arg8[%c0_18, %c0_19] : memref<256x128xf32, #tpu.memory_space<vmem>>, vector<256x128xf32>
    tpu.vector_store %arg8[%c0_18, %c0_19], %24 {strides = array<i32>} : memref<256x128xf32, #tpu.memory_space<vmem>>, vector<256x128xf32>,
    return
  }
  func.func @transform_0(%arg0: i32) -> (i32, i32) {
    %c0_i32 = arith.constant 0 : i32
    %c0_i32_0 = arith.constant 0 : i32
    return %arg0, %c0_i32 : i32, i32
  }
  func.func @transform_1(%arg0: i32) -> (i32, i32) {
    %c0_i32 = arith.constant 0 : i32
    %c0_i32_0 = arith.constant 0 : i32
    %c0_i32_1 = arith.constant 0 : i32
    return %c0_i32, %c0_i32_0 : i32, i32
  }
  func.func @transform_2(%arg0: i32) -> (i32, i32) {
    %c0_i32 = arith.constant 0 : i32
    %c0_i32_0 = arith.constant 0 : i32
    %c0_i32_1 = arith.constant 0 : i32
    return %c0_i32, %c0_i32_0 : i32, i32
  }
  func.func @transform_3(%arg0: i32) -> (i32, i32) {
    %c0_i32 = arith.constant 0 : i32
    %c0_i32_0 = arith.constant 0 : i32
    %c0_i32_1 = arith.constant 0 : i32
    return %c0_i32, %c0_i32_0 : i32, i32
  }
  func.func @transform_4(%arg0: i32) -> (i32, i32) {
    %c0_i32 = arith.constant 0 : i32
    %c0_i32_0 = arith.constant 0 : i32
    %c0_i32_1 = arith.constant 0 : i32
    return %c0_i32, %c0_i32_0 : i32, i32
  }
  func.func @transform_5(%arg0: i32) -> (i32, i32) {
    %c0_i32 = arith.constant 0 : i32
    %c0_i32_0 = arith.constant 0 : i32
    %c0_i32_1 = arith.constant 0 : i32
    return %c0_i32, %c0_i32_0 : i32, i32
  }
  func.func @transform_6(%arg0: i32) -> (i32, i32) {
    %c0_i32 = arith.constant 0 : i32
    %c0_i32_0 = arith.constant 0 : i32
    %c0_i32_1 = arith.constant 0 : i32
    return %c0_i32, %c0_i32_0 : i32, i32
  }
  func.func @transform_7(%arg0: i32) -> (i32, i32) {
    %c0_i32 = arith.constant 0 : i32
    %c0_i32_0 = arith.constant 0 : i32
    return %arg0, %c0_i32 : i32, i32
  }
}

</mosaic_0001>

<bundles_post_ra>
// kernel: tpu_custom_call.1
= control target key start
LH: loop header
LB: loop body
LE: loop exit
PB: predicated region body
PF: predicated region fallthrough
CT: control target
= control target key end

     0   :  { %vm99_vm0 = vcmask 261120   ;;  %s1569_s0 = inlined_call_operand.vmem [shape: f32[256,32], index: 0, kind: input, shape index: {}]   ;;  %s1570_s1 = inlined_call_operand.vmem [shape: bf16[32,128], index: 1, kind: input, shape index: {}]   ;;  %s1571_s2 = inlined_call_operand.vmem [shape: f32[1,128], index: 2, kind: input, shape index: {}]   ;;  %s1572_s3 = inlined_call_operand.vmem [shape: bf16[128,128], index: 3, kind: input, shape index: {}]   ;;  %s1573_s4 = inlined_call_operand.vmem [shape: f32[1,128], index: 4, kind: input, shape index: {}]   ;;  %s1574_s5 = inlined_call_operand.vmem [shape: bf16[128,128], index: 5, kind: input, shape index: {}]   ;;  %s1575_s6 = inlined_call_operand.vmem [shape: f32[1,128], index: 6, kind: input, shape index: {}]   ;;  %s1576_s7 = inlined_call_operand.hbm [shape: f32[256,128], index: 7, kind: output, shape index: {}]  }
   0x1   :  { %v1191_v0 = vld [vmem:[%s1570_s1 + $0x8] sm:$0xff]   ;;  %v1192_v1 = vld [vmem:[%s1570_s1] sm:$0xff]   ;;  %v30_v5 = vld [vmem:[%s1569_s0 + $0x10] sm:$0xff] }
   0x2   :  { %1052 = vmatprep.subr.bf16.mxu0 %v1191_v0  ;;  %v28_v2 = vld [vmem:[%s1569_s0] sm:$0xff]  ;;  %v29_v3 = vld [vmem:[%s1569_s0 + $0x8] sm:$0xff]  ;;  %1184 = vmatprep.subr.bf16.mxu1 %v1191_v0  ;;  %v31_v6 = vld [vmem:[%s1569_s0 + $0x18] sm:$0xff] }
   0x3   :  { %1053 = vmatpush3.bf16.msra.mxu0 %v1191_v0  ;;  %v65_v4 = vpack.c.bf16 %v29_v3, %v28_v2  ;;  %1186 = vmatpush3.bf16.msra.mxu1 %v1191_v0  ;;  %v32_v7 = vld [vmem:[%s1569_s0 + $0x20] sm:$0xff]  ;;  %v33_v8 = vld [vmem:[%s1569_s0 + $0x28] sm:$0xff]  ;;  %v66_v9 = vpack.c.bf16 %v31_v6, %v30_v5  ;;  %v46_v14 = vld [vmem:[%s1569_s0 + $0x90] sm:$0xff] }
   0x4   :  { %1054 = vmatprep.subr.bf16.mxu0 %v1192_v1  ;;  %1185 = vmatprep.subr.bf16.mxu1 %v1192_v1  ;;  %v67_v10 = vpack.c.bf16 %v33_v8, %v32_v7  ;;  %v44_v11 = vld [vmem:[%s1569_s0 + $0x80] sm:$0xff]  ;;  %v45_v12 = vld [vmem:[%s1569_s0 + $0x88] sm:$0xff]  ;;  %v47_v15 = vld [vmem:[%s1569_s0 + $0x98] sm:$0xff] }
   0x5   :  { %1056 = vmatprep.mubr.msk.bf16.mxu0 %vm99_vm0, %v65_v4  ;;  %v73_v13 = vpack.c.bf16 %v45_v12, %v44_v11  ;;  %v48_v16 = vld [vmem:[%s1569_s0 + $0xa0] sm:$0xff]  ;;  %v74_v17 = vpack.c.bf16 %v47_v15, %v46_v14  ;;  %v49_v18 = vld [vmem:[%s1569_s0 + $0xa8] sm:$0xff]  ;;  %v34_v19 = vld [vmem:[%s1569_s0 + $0x30] sm:$0xff] }
   0x6   :  { %v35_v20 = vld [vmem:[%s1569_s0 + $0x38] sm:$0xff]  ;;  %v36_v21 = vld [vmem:[%s1569_s0 + $0x40] sm:$0xff]  ;;  %v75_v22 = vpack.c.bf16 %v49_v18, %v48_v16  ;;  %v37_v23 = vld [vmem:[%s1569_s0 + $0x48] sm:$0xff] }
   0x7   :  { %1055 = vmatpush3.bf16.msra.mxu0 %v1192_v1  ;;  %1187 = vmatpush3.bf16.msra.mxu1 %v1192_v1  ;;  %v50_v24 = vld [vmem:[%s1569_s0 + $0xb0] sm:$0xff]  ;;  %v51_v25 = vld [vmem:[%s1569_s0 + $0xb8] sm:$0xff]  ;;  %v52_v26 = vld [vmem:[%s1569_s0 + $0xc0] sm:$0xff]  ;;  %v68_v29 = vpack.c.bf16 %v35_v20, %v34_v19  ;;  %v69_v31 = vpack.c.bf16 %v37_v23, %v36_v21 }
   0x8   :  { %1072 = vmatprep.mubr.msk.bf16.mxu1 %vm99_vm0, %v73_v13  ;;  %v53_v27 = vld [vmem:[%s1569_s0 + $0xc8] sm:$0xff]  ;;  %v1193_v28 = vld [vmem:[%s1572_s3 + $0x38] sm:$0xff]   ;;  %v1194_v30 = vld [vmem:[%s1572_s3 + $0x30] sm:$0xff]   ;;  %v76_v32 = vpack.c.bf16 %v51_v25, %v50_v24 }
   0x9   :  { %1088 = vmatprep.subr.bf16.mxu1 %v1193_v28  ;;  %v77_v33 = vpack.c.bf16 %v53_v27, %v52_v26  ;;  %v38_v34 = vld [vmem:[%s1569_s0 + $0x50] sm:$0xff]  ;;  %v39_v35 = vld [vmem:[%s1569_s0 + $0x58] sm:$0xff]  ;;  %v1195_v36 = vld [vmem:[%s1572_s3 + $0x28] sm:$0xff]  }
   0xa   :  { %1057 = vmatmul.mubr.msk.bf16.vlgmr.msra.gmra.mxu0 %vm99_vm0, %v66_v9  ;;  %1073 = vmatmul.mubr.msk.bf16.vlgmr.msra.gmra.mxu1 %vm99_vm0, %v74_v17  ;;  %v40_v37 = vld [vmem:[%s1569_s0 + $0x60] sm:$0xff]  ;;  %v41_v38 = vld [vmem:[%s1569_s0 + $0x68] sm:$0xff]  ;;  %v54_v39 = vld [vmem:[%s1569_s0 + $0xd0] sm:$0xff]  ;;  %v70_v44 = vpack.c.bf16 %v39_v35, %v38_v34 }
   0xb   :  { %1060 = vmatprep.mubr.msk.bf16.mxu0 %vm99_vm0, %v67_v10  ;;  %1076 = vmatprep.mubr.msk.bf16.mxu1 %vm99_vm0, %v75_v22  ;;  %v55_v40 = vld [vmem:[%s1569_s0 + $0xd8] sm:$0xff]  ;;  %v56_v41 = vld [vmem:[%s1569_s0 + $0xe0] sm:$0xff]  ;;  %v57_v42 = vld [vmem:[%s1569_s0 + $0xe8] sm:$0xff]  ;;  %v71_v45 = vpack.c.bf16 %v41_v38, %v40_v37 }
   0xc   :  { %1089 = vmatpush3.bf16.msra.mxu1 %v1193_v28  ;;  %v1196_v43 = vld [vmem:[%s1572_s3 + $0x20] sm:$0xff]   ;;  %v78_v46 = vpack.c.bf16 %v55_v40, %v54_v39  ;;  %v79_v47 = vpack.c.bf16 %v57_v42, %v56_v41  ;;  %v1197_v48 = vld [vmem:[%s1572_s3 + $0x18] sm:$0xff]  }
   0xd   :  { %1090 = vmatprep.subr.bf16.mxu1 %v1194_v30 }
  0x10   :  { %1091 = vmatpush3.bf16.msra.mxu1 %v1194_v30 }
  0x11   :  { %1092 = vmatprep.subr.bf16.mxu1 %v1195_v36 }
  0x12   :  { %1061 = vmatmul.mubr.msk.bf16.gmra.mxu0 %vm99_vm0, %v68_v29  ;;  %1077 = vmatmul.mubr.msk.bf16.gmra.mxu1 %vm99_vm0, %v76_v32 }
  0x13   :  { %1064 = vmatprep.mubr.msk.bf16.mxu0 %vm99_vm0, %v69_v31  ;;  %1080 = vmatprep.mubr.msk.bf16.mxu1 %vm99_vm0, %v77_v33 }
  0x14   :  { %1093 = vmatpush3.bf16.msra.mxu1 %v1195_v36 }
  0x15   :  { %1094 = vmatprep.subr.bf16.mxu1 %v1196_v43 }
  0x16   :  { %12 = vsyncpa [#allocation3], 0  ;;  %v42_v49 = vld [vmem:[%s1569_s0 + $0x70] sm:$0xff]  ;;  %v43_v50 = vld [vmem:[%s1569_s0 + $0x78] sm:$0xff] }
  0x17   :  { %v58_v51 = vld [vmem:[%s1569_s0 + $0xf0] sm:$0xff]  ;;  %v59_v52 = vld [vmem:[%s1569_s0 + $0xf8] sm:$0xff]  ;;  %v72_v53 = vpack.c.bf16 %v43_v50, %v42_v49  ;;  %v1199_v56 = vld [vmem:[%s1572_s3 + $0x8] sm:$0xff]  }
  0x18   :  { %1095 = vmatpush3.bf16.msra.mxu1 %v1196_v43  ;;  %v80_v54 = vpack.c.bf16 %v59_v52, %v58_v51  ;;  %v1198_v55 = vld [vmem:[%s1572_s3 + $0x10] sm:$0xff]   ;;  %v1200_v57 = vld [vmem:[%s1572_s3] sm:$0xff]   ;;  %v1201_v58 = vld [vmem:[%s1574_s5 + $0x38] sm:$0xff]  }
  0x19   :  { %1096 = vmatprep.subr.bf16.mxu1 %v1197_v48  ;;  %v1202_v59 = vld [vmem:[%s1574_s5 + $0x30] sm:$0xff]   ;;  %1136 = vmatprep.subr.bf16.mxu0 %v1201_v58  ;;  %v1203_v60 = vld [vmem:[%s1574_s5 + $0x28] sm:$0xff]   ;;  %v1204_v61 = vld [vmem:[%s1574_s5 + $0x20] sm:$0xff]  }
  0x1a   :  { %1065 = vmatmul.mubr.msk.bf16.gmra.mxu0 %vm99_vm0, %v70_v44  ;;  %1081 = vmatmul.mubr.msk.bf16.gmra.mxu1 %vm99_vm0, %v78_v46  ;;  %v1205_v62 = vld [vmem:[%s1574_s5 + $0x18] sm:$0xff]   ;;  %v1436_v2 = vld [vmem:[%s1571_s2] ss:$0 sm:$0xff] }
  0x1b   :  { %1068 = vmatprep.mubr.msk.bf16.mxu0 %vm99_vm0, %v71_v45  ;;  %1084 = vmatprep.mubr.msk.bf16.mxu1 %vm99_vm0, %v79_v47 }
  0x1c   :  { %1097 = vmatpush3.bf16.msra.mxu1 %v1197_v48  ;;  %1137 = vmatpush3.bf16.msra.mxu0 %v1201_v58 }
  0x1d   :  { %1098 = vmatprep.subr.bf16.mxu1 %v1198_v55  ;;  %1138 = vmatprep.subr.bf16.mxu0 %v1202_v59 }
  0x20   :  { %1099 = vmatpush3.bf16.msra.mxu1 %v1198_v55  ;;  %1139 = vmatpush3.bf16.msra.mxu0 %v1202_v59 }
  0x21   :  { %1100 = vmatprep.subr.bf16.mxu1 %v1199_v56  ;;  %1140 = vmatprep.subr.bf16.mxu0 %v1203_v60 }
  0x22   :  { %1069 = vmatmul.mubr.msk.bf16.gmra.mxu0 %vm99_vm0, %v72_v53  ;;  %1085 = vmatmul.mubr.msk.bf16.gmra.mxu1 %vm99_vm0, %v80_v54 }
  0x24   :  { %1101 = vmatpush3.bf16.msra.mxu1 %v1199_v56  ;;  %1141 = vmatpush3.bf16.msra.mxu0 %v1203_v60 }
  0x25   :  { %1102 = vmatprep.subr.bf16.mxu1 %v1200_v57  ;;  %1142 = vmatprep.subr.bf16.mxu0 %v1204_v61 }
  0x28   :  { %1103 = vmatpush3.bf16.msra.mxu1 %v1200_v57  ;;  %1143 = vmatpush3.bf16.msra.mxu0 %v1204_v61 }
  0x29   :  { %1144 = vmatprep.subr.bf16.mxu0 %v1205_v62 }
  0x2c   :  { %1145 = vmatpush3.bf16.msra.mxu0 %v1205_v62 }
  0xca   :  { %v1058_v63 = vpop.f32.mrf.mxu0  ;;  %v1431_v0 = vpop.f32.mrf.mxu1 }
  0xcb   :  { %v191_v8 = vadd.f32 %v1058_v63, %v1436_v2 }
  0xcc   :  { %v182_v1 = vpop.f32.mrf.mxu0  ;;  %v246_v3 = vpop.f32.mrf.mxu1 }
  0xcd   :  { %v183_v5 = vadd.f32 %v1436_v2, %v182_v1  ;;  %v311_v17 = vmax.f32 %v191_v8, 0.0  ;;  %v247_v53 = vadd.f32 %v1436_v2, %v246_v3 }
  0xce   :  { %v1059_v4 = vpop.f32.mrf.mxu0  ;;  %v1440_v7 = vpop.f32.mrf.mxu1 }
  0xcf   :  { %v194_v6 = vadd.f32 %v1059_v4, %v1436_v2  ;;  %v309_v14 = vmax.f32 %v183_v5, 0.0  ;;  %v325_v62 = vmax.f32 %v247_v53, 0.0  ;;  %v1495_v53 = vld [vmem:[%s1573_s4] ss:$0 sm:$0xff] }
  0xd0   :  { %v185_v9 = vpop.f32.mrf.mxu0  ;;  %v249_v11 = vpop.f32.mrf.mxu1 }
  0xd1   :  { %v186_v10 = vadd.f32 %v1436_v2, %v185_v9  ;;  %v312_v12 = vmax.f32 %v194_v6, 0.0  ;;  %v250_v54 = vadd.f32 %v1436_v2, %v249_v11 }
  0xd2   :  { %v1062_v13 = vpop.f32.mrf.mxu0  ;;  %v1444_v16 = vpop.f32.mrf.mxu1 }
  0xd3   :  { %v310_v15 = vmax.f32 %v186_v10, 0.0  ;;  %v359_v21 = vpack.c.bf16 %v312_v12, %v311_v17  ;;  %v207_v26 = vadd.f32 %v1062_v13, %v1436_v2  ;;  %v326_v1 = vmax.f32 %v250_v54, 0.0 }
  0xd4   :  { %v198_v18 = vpop.f32.mrf.mxu0  ;;  %v262_v20 = vpop.f32.mrf.mxu1  ;;  %v255_v13 = vadd.f32 %v1431_v0, %v1436_v2  ;;  %v271_v0 = vadd.f32 %v1444_v16, %v1436_v2 }
  0xd5   :  { %v358_v19 = vpack.c.bf16 %v310_v15, %v309_v14  ;;  %v199_v23 = vadd.f32 %v1436_v2, %v198_v18  ;;  %v315_v34 = vmax.f32 %v207_v26, 0.0  ;;  %v366_v10 = vpack.c.bf16 %v326_v1, %v325_v62 }
  0xd6   :  { %v1063_v22 = vpop.f32.mrf.mxu0  ;;  %v1448_v25 = vpop.f32.mrf.mxu1  ;;  %v263_v11 = vadd.f32 %v1436_v2, %v262_v20  ;;  %v258_v15 = vadd.f32 %v1440_v7, %v1436_v2 }
  0xd7   :  { %v210_v24 = vadd.f32 %v1063_v22, %v1436_v2  ;;  %1104 = vmatprep.mubr.bf16.mxu1 %v358_v19  ;;  %v313_v32 = vmax.f32 %v199_v23, 0.0  ;;  %v274_v7 = vadd.f32 %v1448_v25, %v1436_v2 }
  0xd8   :  { %v201_v27 = vpop.f32.mrf.mxu0  ;;  %1105 = vmatmul.mubr.bf16.vlgmr.msra.gmra.mxu1 %v359_v21  ;;  %v265_v31 = vpop.f32.mrf.mxu1  ;;  %v329_v18 = vmax.f32 %v263_v11, 0.0  ;;  %v327_v21 = vmax.f32 %v255_v13, 0.0  ;;  %v328_v22 = vmax.f32 %v258_v15, 0.0 }
  0xd9   :  { %v202_v28 = vadd.f32 %v1436_v2, %v201_v27  ;;  %v316_v29 = vmax.f32 %v210_v24, 0.0  ;;  %v266_v12 = vadd.f32 %v1436_v2, %v265_v31  ;;  %v331_v31 = vmax.f32 %v271_v0, 0.0 }
  0xda   :  { %v1066_v30 = vpop.f32.mrf.mxu0  ;;  %v1452_v39 = vpop.f32.mrf.mxu1  ;;  %v367_v27 = vpack.c.bf16 %v328_v22, %v327_v21 }
  0xdb   :  { %v314_v33 = vmax.f32 %v202_v28, 0.0  ;;  %v361_v37 = vpack.c.bf16 %v316_v29, %v315_v34  ;;  %v223_v42 = vadd.f32 %v1066_v30, %v1436_v2  ;;  %v330_v19 = vmax.f32 %v266_v12, 0.0 }
  0xdc   :  { %v214_v35 = vpop.f32.mrf.mxu0  ;;  %v278_v47 = vpop.f32.mrf.mxu1  ;;  %v287_v16 = vadd.f32 %v1452_v39, %v1436_v2  ;;  %v1206_v39 = vld [vmem:[%s1574_s5 + $0x10] sm:$0xff]  }
  0xdd   :  { %v360_v36 = vpack.c.bf16 %v314_v33, %v313_v32  ;;  %v215_v40 = vadd.f32 %v1436_v2, %v214_v35  ;;  %v319_v50 = vmax.f32 %v223_v42, 0.0  ;;  %v368_v24 = vpack.c.bf16 %v330_v19, %v329_v18  ;;  %1146 = vmatprep.subr.bf16.mxu0 %v1206_v39 }
  0xde   :  { %v1067_v38 = vpop.f32.mrf.mxu0  ;;  %v1083_v57 = vpop.f32.mrf.mxu1  ;;  %v279_v20 = vadd.f32 %v1436_v2, %v278_v47  ;;  %v332_v32 = vmax.f32 %v274_v7, 0.0  ;;  %1147 = vmatpush3.bf16.msra.mxu0 %v1206_v39 }
  0xdf   :  { %v226_v41 = vadd.f32 %v1067_v38, %v1436_v2  ;;  %1108 = vmatprep.mubr.bf16.mxu1 %v360_v36  ;;  %v317_v48 = vmax.f32 %v215_v40, 0.0  ;;  %v290_v38 = vadd.f32 %v1083_v57, %v1436_v2 }
  0xe0   :  { %v217_v43 = vpop.f32.mrf.mxu0  ;;  %1109 = vmatmul.mubr.bf16.gmra.mxu1 %v361_v37  ;;  %v281_v3 = vpop.f32.mrf.mxu1  ;;  %v333_v29 = vmax.f32 %v279_v20, 0.0  ;;  %v369_v37 = vpack.c.bf16 %v332_v32, %v331_v31 }
  0xe1   :  { %v218_v44 = vadd.f32 %v1436_v2, %v217_v43  ;;  %v320_v45 = vmax.f32 %v226_v41, 0.0  ;;  %v282_v26 = vadd.f32 %v1436_v2, %v281_v3  ;;  %v335_v41 = vmax.f32 %v287_v16, 0.0 }
  0xe2   :  { %v1070_v46 = vpop.f32.mrf.mxu0  ;;  %v1086_v17 = vpop.f32.mrf.mxu1  ;;  %v336_v42 = vmax.f32 %v290_v38, 0.0 }
  0xe3   :  { %v318_v49 = vmax.f32 %v218_v44, 0.0  ;;  %v363_v55 = vpack.c.bf16 %v320_v45, %v319_v50  ;;  %v239_v60 = vadd.f32 %v1070_v46, %v1436_v2  ;;  %v334_v30 = vmax.f32 %v282_v26, 0.0  ;;  %v1207_v50 = vld [vmem:[%s1574_s5 + $0x8] sm:$0xff]  }
  0xe4   :  { %v230_v51 = vpop.f32.mrf.mxu0  ;;  %v294_v23 = vpop.f32.mrf.mxu1  ;;  %v371_v44 = vpack.c.bf16 %v336_v42, %v335_v41  ;;  %v303_v45 = vadd.f32 %v1086_v17, %v1436_v2  ;;  %1148 = vmatprep.subr.bf16.mxu0 %v1207_v50 }
  0xe5   :  { %v362_v52 = vpack.c.bf16 %v318_v49, %v317_v48  ;;  %v231_v58 = vadd.f32 %v1436_v2, %v230_v51  ;;  %v323_v8 = vmax.f32 %v239_v60, 0.0  ;;  %v370_v34 = vpack.c.bf16 %v334_v30, %v333_v29  ;;  %1149 = vmatpush3.bf16.msra.mxu0 %v1207_v50 }
  0xe6   :  { %v1071_v56 = vpop.f32.mrf.mxu0  ;;  %v1087_v28 = vpop.f32.mrf.mxu1  ;;  %v295_v35 = vadd.f32 %v1436_v2, %v294_v23  ;;  %v339_v47 = vmax.f32 %v303_v45, 0.0 }
  0xe7   :  { %v242_v59 = vadd.f32 %v1071_v56, %v1436_v2  ;;  %1112 = vmatprep.mubr.bf16.mxu1 %v362_v52  ;;  %v321_v5 = vmax.f32 %v231_v58, 0.0  ;;  %v306_v46 = vadd.f32 %v1087_v28, %v1436_v2 }
  0xe8   :  { %v233_v61 = vpop.f32.mrf.mxu0  ;;  %1113 = vmatmul.mubr.bf16.gmra.mxu1 %v363_v55  ;;  %v297_v33 = vpop.f32.mrf.mxu1  ;;  %v337_v25 = vmax.f32 %v295_v35, 0.0 }
  0xe9   :  { %v234_v63 = vadd.f32 %v1436_v2, %v233_v61  ;;  %v324_v4 = vmax.f32 %v242_v59, 0.0  ;;  %v298_v36 = vadd.f32 %v1436_v2, %v297_v33  ;;  %v340_v48 = vmax.f32 %v306_v46, 0.0  ;;  %v1208_v2 = vld [vmem:[%s1574_s5] sm:$0xff]  }
  0xea   :  { %1150 = vmatprep.subr.bf16.mxu0 %v1208_v2 }
  0xeb   :  { %v322_v6 = vmax.f32 %v234_v63, 0.0  ;;  %v365_v14 = vpack.c.bf16 %v324_v4, %v323_v8  ;;  %v338_v40 = vmax.f32 %v298_v36, 0.0  ;;  %v373_v49 = vpack.c.bf16 %v340_v48, %v339_v47  ;;  %1151 = vmatpush3.bf16.msra.mxu0 %v1208_v2 }
  0xed   :  { %v364_v9 = vpack.c.bf16 %v322_v6, %v321_v5  ;;  %v372_v43 = vpack.c.bf16 %v338_v40, %v337_v25 }
  0xef   :  { %1116 = vmatprep.mubr.bf16.mxu1 %v364_v9 }
  0xf0   :  { %1117 = vmatmul.mubr.bf16.gmra.mxu1 %v365_v14 }
  0xf1   :  { %1120 = vmatprep.mubr.bf16.mxu1 %v366_v10 }
  0xf8   :  { %1121 = vmatmul.mubr.bf16.gmra.mxu1 %v367_v27 }
  0xf9   :  { %1124 = vmatprep.mubr.bf16.mxu1 %v368_v24 }
 0x100   :  { %1125 = vmatmul.mubr.bf16.gmra.mxu1 %v369_v37 }
 0x101   :  { %1128 = vmatprep.mubr.bf16.mxu1 %v370_v34 }
 0x108   :  { %1129 = vmatmul.mubr.bf16.gmra.mxu1 %v371_v44 }
 0x109   :  { %1132 = vmatprep.mubr.bf16.mxu1 %v372_v43 }
 0x110   :  { %1133 = vmatmul.mubr.bf16.gmra.mxu1 %v373_v49 }
 0x198   :  { %v1106_v51 = vpop.f32.mrf.mxu1 }
 0x199   :  { %v471_v57 = vadd.f32 %v1106_v51, %v1495_v53 }
 0x19a   :  { %v462_v52 = vpop.f32.mrf.mxu1 }
 0x19b   :  { %v463_v55 = vadd.f32 %v1495_v53, %v462_v52  ;;  %v591_v1 = vmax.f32 %v471_v57, 0.0 }
 0x19c   :  { %v1107_v54 = vpop.f32.mrf.mxu1 }
 0x19d   :  { %v474_v56 = vadd.f32 %v1107_v54, %v1495_v53  ;;  %v589_v62 = vmax.f32 %v463_v55, 0.0 }
 0x19e   :  { %v465_v58 = vpop.f32.mrf.mxu1 }
 0x19f   :  { %v466_v59 = vadd.f32 %v1495_v53, %v465_v58  ;;  %v592_v60 = vmax.f32 %v474_v56, 0.0 }
 0x1a0   :  { %v1110_v61 = vpop.f32.mrf.mxu1 }
 0x1a1   :  { %v590_v63 = vmax.f32 %v466_v59, 0.0  ;;  %v639_v5 = vpack.c.bf16 %v592_v60, %v591_v1  ;;  %v487_v10 = vadd.f32 %v1110_v61, %v1495_v53 }
 0x1a2   :  { %v478_v4 = vpop.f32.mrf.mxu1 }
 0x1a3   :  { %v638_v3 = vpack.c.bf16 %v590_v63, %v589_v62  ;;  %v479_v8 = vadd.f32 %v1495_v53, %v478_v4  ;;  %v595_v18 = vmax.f32 %v487_v10, 0.0 }
 0x1a4   :  { %v1111_v6 = vpop.f32.mrf.mxu1 }
 0x1a5   :  { %v490_v9 = vadd.f32 %v1111_v6, %v1495_v53  ;;  %1152 = vmatprep.mubr.bf16.mxu0 %v638_v3  ;;  %v593_v15 = vmax.f32 %v479_v8, 0.0 }
 0x1a6   :  { %v481_v11 = vpop.f32.mrf.mxu1  ;;  %1153 = vmatmul.mubr.bf16.vlgmr.msra.gmra.mxu0 %v639_v5 }
 0x1a7   :  { %v482_v12 = vadd.f32 %v1495_v53, %v481_v11  ;;  %v596_v13 = vmax.f32 %v490_v9, 0.0 }
 0x1a8   :  { %v1114_v14 = vpop.f32.mrf.mxu1 }
 0x1a9   :  { %v594_v17 = vmax.f32 %v482_v12, 0.0  ;;  %v641_v22 = vpack.c.bf16 %v596_v13, %v595_v18  ;;  %v503_v26 = vadd.f32 %v1114_v14, %v1495_v53 }
 0x1aa   :  { %v494_v19 = vpop.f32.mrf.mxu1 }
 0x1ab   :  { %v640_v21 = vpack.c.bf16 %v594_v17, %v593_v15  ;;  %v495_v24 = vadd.f32 %v1495_v53, %v494_v19  ;;  %v599_v31 = vmax.f32 %v503_v26, 0.0 }
 0x1ac   :  { %v1115_v23 = vpop.f32.mrf.mxu1 }
 0x1ad   :  { %v506_v20 = vadd.f32 %v1115_v23, %v1495_v53  ;;  %1156 = vmatprep.mubr.bf16.mxu0 %v640_v21  ;;  %v597_v29 = vmax.f32 %v495_v24, 0.0 }
 0x1ae   :  { %v497_v27 = vpop.f32.mrf.mxu1  ;;  %1157 = vmatmul.mubr.bf16.gmra.mxu0 %v641_v22 }
 0x1af   :  { %v498_v0 = vadd.f32 %v1495_v53, %v497_v27  ;;  %v600_v7 = vmax.f32 %v506_v20, 0.0 }
 0x1b0   :  { %v1118_v28 = vpop.f32.mrf.mxu1 }
 0x1b1   :  { %v598_v30 = vmax.f32 %v498_v0, 0.0  ;;  %v643_v34 = vpack.c.bf16 %v600_v7, %v599_v31  ;;  %v519_v16 = vadd.f32 %v1118_v28, %v1495_v53 }
 0x1b2   :  { %v510_v32 = vpop.f32.mrf.mxu1 }
 0x1b3   :  { %v642_v33 = vpack.c.bf16 %v598_v30, %v597_v29  ;;  %v511_v36 = vadd.f32 %v1495_v53, %v510_v32  ;;  %v603_v44 = vmax.f32 %v519_v16, 0.0 }
 0x1b4   :  { %v1119_v35 = vpop.f32.mrf.mxu1 }
 0x1b5   :  { %v522_v37 = vadd.f32 %v1119_v35, %v1495_v53  ;;  %1160 = vmatprep.mubr.bf16.mxu0 %v642_v33  ;;  %v601_v42 = vmax.f32 %v511_v36, 0.0 }
 0x1b6   :  { %v513_v38 = vpop.f32.mrf.mxu1  ;;  %1161 = vmatmul.mubr.bf16.gmra.mxu0 %v643_v34 }
 0x1b7   :  { %v514_v25 = vadd.f32 %v1495_v53, %v513_v38  ;;  %v604_v40 = vmax.f32 %v522_v37, 0.0 }
 0x1b8   :  { %v1122_v41 = vpop.f32.mrf.mxu1 }
 0x1b9   :  { %v602_v43 = vmax.f32 %v514_v25, 0.0  ;;  %v645_v47 = vpack.c.bf16 %v604_v40, %v603_v44  ;;  %v535_v50 = vadd.f32 %v1122_v41, %v1495_v53  ;;  %v1532_v25 = vld [vmem:[%s1575_s6] ss:$0 sm:$0xff]  ;;  %s1231_s6 = smov [#allocation2]  }
 0x1ba   :  { %v526_v45 = vpop.f32.mrf.mxu1  ;;  %s938_s29 = sshll.u32 %s1231_s6, 4  ;;  %s939_s29 = int_to_ptr.vmem [resolvable:$true] %s938_s29 }
 0x1bb   :  { %v644_v46 = vpack.c.bf16 %v602_v43, %v601_v42  ;;  %v527_v49 = vadd.f32 %v1495_v53, %v526_v45  ;;  %v607_v57 = vmax.f32 %v535_v50, 0.0  ;;  %s1209_s30 = scalar_lea.vmem %s939_s29, 4096  ;;  %p1214_p1 = scmp.lt.s32.totalorder %s939_s29, %s939_s29 }
 0x1bc   :  { %v1123_v48 = vpop.f32.mrf.mxu1  ;;  %p1210_p0 = scmp.ne.s32.totalorder %s939_s29, %s1209_s30  ;;  %p1215_p2 = scmp.lt.s32.totalorder %s1209_s30, %s1209_s30 }
 0x1bd   :  { %v538_v39 = vadd.f32 %v1123_v48, %v1495_v53  ;;  %1164 = vmatprep.mubr.bf16.mxu0 %v644_v46  ;;  %v605_v55 = vmax.f32 %v527_v49, 0.0 }
 0x1be   :  { %v529_v2 = vpop.f32.mrf.mxu1  ;;  %1165 = vmatmul.mubr.bf16.gmra.mxu0 %v645_v47  ;;  %p1216_p3 = por %p1215_p2, %p1214_p1 }
 0x1bf   :  { %v530_v51 = vadd.f32 %v1495_v53, %v529_v2  ;;  %v608_v52 = vmax.f32 %v538_v39, 0.0 }
 0x1c0   :  { %v1126_v54 = vpop.f32.mrf.mxu1  ;;  %p1217_p4 = pnand %p1216_p3, %p1210_p0 }
 0x1c1   :  { %v606_v56 = vmax.f32 %v530_v51, 0.0  ;;  %v647_v60 = vpack.c.bf16 %v608_v52, %v607_v57  ;;  %v551_v1 = vadd.f32 %v1126_v54, %v1495_v53 }
 0x1c2   :  { %v542_v58 = vpop.f32.mrf.mxu1 }
 0x1c3   :  { %v646_v59 = vpack.c.bf16 %v606_v56, %v605_v55  ;;  %v543_v62 = vadd.f32 %v1495_v53, %v542_v58  ;;  %v611_v10 = vmax.f32 %v551_v1, 0.0 }
 0x1c4   :  { %v1127_v61 = vpop.f32.mrf.mxu1 }
 0x1c5   :  { %v554_v63 = vadd.f32 %v1127_v61, %v1495_v53  ;;  %1168 = vmatprep.mubr.bf16.mxu0 %v646_v59  ;;  %v609_v8 = vmax.f32 %v543_v62, 0.0 }
 0x1c6   :  { %v545_v4 = vpop.f32.mrf.mxu1  ;;  %1169 = vmatmul.mubr.bf16.gmra.mxu0 %v647_v60 }
 0x1c7   :  { %v546_v3 = vadd.f32 %v1495_v53, %v545_v4  ;;  %v612_v5 = vmax.f32 %v554_v63, 0.0 }
 0x1c8   :  { %v1130_v6 = vpop.f32.mrf.mxu1 }
 0x1c9   :  { %v610_v9 = vmax.f32 %v546_v3, 0.0  ;;  %v649_v13 = vpack.c.bf16 %v612_v5, %v611_v10  ;;  %v567_v18 = vadd.f32 %v1130_v6, %v1495_v53 }
 0x1ca   :  { %v558_v11 = vpop.f32.mrf.mxu1 }
 0x1cb   :  { %v648_v12 = vpack.c.bf16 %v610_v9, %v609_v8  ;;  %v559_v15 = vadd.f32 %v1495_v53, %v558_v11  ;;  %v615_v26 = vmax.f32 %v567_v18, 0.0 }
 0x1cc   :  { %v1131_v14 = vpop.f32.mrf.mxu1 }
 0x1cd   :  { %v570_v17 = vadd.f32 %v1131_v14, %v1495_v53  ;;  %1172 = vmatprep.mubr.bf16.mxu0 %v648_v12  ;;  %v613_v24 = vmax.f32 %v559_v15, 0.0 }
 0x1ce   :  { %v561_v19 = vpop.f32.mrf.mxu1  ;;  %1173 = vmatmul.mubr.bf16.gmra.mxu0 %v649_v13 }
 0x1cf   :  { %v562_v21 = vadd.f32 %v1495_v53, %v561_v19  ;;  %v616_v22 = vmax.f32 %v570_v17, 0.0 }
 0x1d0   :  { %v1134_v23 = vpop.f32.mrf.mxu1 }
 0x1d1   :  { %v614_v20 = vmax.f32 %v562_v21, 0.0  ;;  %v651_v7 = vpack.c.bf16 %v616_v22, %v615_v26  ;;  %v583_v31 = vadd.f32 %v1134_v23, %v1495_v53 }
 0x1d2   :  { %v574_v27 = vpop.f32.mrf.mxu1 }
 0x1d3   :  { %v650_v0 = vpack.c.bf16 %v614_v20, %v613_v24  ;;  %v575_v29 = vadd.f32 %v1495_v53, %v574_v27  ;;  %v619_v37 = vmax.f32 %v583_v31, 0.0 }
 0x1d4   :  { %v1135_v28 = vpop.f32.mrf.mxu1 }
 0x1d5   :  { %v586_v30 = vadd.f32 %v1135_v28, %v1495_v53  ;;  %1176 = vmatprep.mubr.bf16.mxu0 %v650_v0  ;;  %v617_v35 = vmax.f32 %v575_v29, 0.0 }
 0x1d6   :  { %v577_v32 = vpop.f32.mrf.mxu1  ;;  %1177 = vmatmul.mubr.bf16.gmra.mxu0 %v651_v7 }
 0x1d7   :  { %v578_v33 = vadd.f32 %v1495_v53, %v577_v32  ;;  %v620_v34 = vmax.f32 %v586_v30, 0.0 }
 0x1d9   :  { %v618_v36 = vmax.f32 %v578_v33, 0.0  ;;  %v653_v38 = vpack.c.bf16 %v620_v34, %v619_v37 }
 0x1db   :  { %v652_v16 = vpack.c.bf16 %v618_v36, %v617_v35 }
 0x1dd   :  { %1180 = vmatprep.mubr.bf16.mxu0 %v652_v16 }
 0x1de   :  { %1181 = vmatmul.mubr.bf16.gmra.mxu0 %v653_v38 }
 0x266   :  { %v1154_v40 = vpop.f32.mrf.mxu0 }
 0x267   :  { %v751_v41 = vadd.f32 %v1154_v40, %v1532_v25 }
 0x268   :  { %v742_v42 = vpop.f32.mrf.mxu0 }
 0x269   :  { %v871_v43 = vmax.f32 %v751_v41, 0.0  ;;  %v743_v53 = vadd.f32 %v1532_v25, %v742_v42 }
 0x26a   :  { %v1155_v44 = vpop.f32.mrf.mxu0 }
 0x26b   :  { %903 = vst [vmem:[#allocation2 + $0x10] sm:$0xff] %v871_v43  ;;  %v869_v45 = vmax.f32 %v743_v53, 0.0  ;;  %v754_v46 = vadd.f32 %v1155_v44, %v1532_v25 }
 0x26c   :  { %v745_v47 = vpop.f32.mrf.mxu0 }
 0x26d   :  { %901 = vst [vmem:[#allocation2] sm:$0xff] %v869_v45  ;;  %v872_v48 = vmax.f32 %v754_v46, 0.0  ;;  %v746_v49 = vadd.f32 %v1532_v25, %v745_v47 }
 0x26e   :  { %v1158_v39 = vpop.f32.mrf.mxu0 }
 0x26f   :  { %904 = vst [vmem:[#allocation2 + $0x18] sm:$0xff] %v872_v48  ;;  %v870_v50 = vmax.f32 %v746_v49, 0.0  ;;  %v767_v2 = vadd.f32 %v1158_v39, %v1532_v25 }
 0x270   :  { %v758_v51 = vpop.f32.mrf.mxu0 }
 0x271   :  { %902 = vst [vmem:[#allocation2 + $0x8] sm:$0xff] %v870_v50  ;;  %v875_v52 = vmax.f32 %v767_v2, 0.0  ;;  %v759_v54 = vadd.f32 %v1532_v25, %v758_v51 }
 0x272   :  { %v1159_v55 = vpop.f32.mrf.mxu0 }
 0x273   :  { %907 = vst [vmem:[#allocation2 + $0x30] sm:$0xff] %v875_v52  ;;  %v873_v56 = vmax.f32 %v759_v54, 0.0  ;;  %v770_v57 = vadd.f32 %v1159_v55, %v1532_v25 }
 0x274   :  { %v761_v58 = vpop.f32.mrf.mxu0 }
 0x275   :  { %905 = vst [vmem:[#allocation2 + $0x20] sm:$0xff] %v873_v56  ;;  %v876_v59 = vmax.f32 %v770_v57, 0.0  ;;  %v762_v60 = vadd.f32 %v1532_v25, %v761_v58 }
 0x276   :  { %v1162_v61 = vpop.f32.mrf.mxu0 }
 0x277   :  { %908 = vst [vmem:[#allocation2 + $0x38] sm:$0xff] %v876_v59  ;;  %v874_v62 = vmax.f32 %v762_v60, 0.0  ;;  %v783_v63 = vadd.f32 %v1162_v61, %v1532_v25 }
 0x278   :  { %v774_v1 = vpop.f32.mrf.mxu0 }
 0x279   :  { %906 = vst [vmem:[#allocation2 + $0x28] sm:$0xff] %v874_v62  ;;  %v879_v4 = vmax.f32 %v783_v63, 0.0  ;;  %v775_v3 = vadd.f32 %v1532_v25, %v774_v1 }
 0x27a   :  { %v1163_v5 = vpop.f32.mrf.mxu0 }
 0x27b   :  { %911 = vst [vmem:[#allocation2 + $0x50] sm:$0xff] %v879_v4  ;;  %v877_v6 = vmax.f32 %v775_v3, 0.0  ;;  %v786_v8 = vadd.f32 %v1163_v5, %v1532_v25 }
 0x27c   :  { %v777_v9 = vpop.f32.mrf.mxu0 }
 0x27d   :  { %909 = vst [vmem:[#allocation2 + $0x40] sm:$0xff] %v877_v6  ;;  %v880_v10 = vmax.f32 %v786_v8, 0.0  ;;  %v778_v11 = vadd.f32 %v1532_v25, %v777_v9 }
 0x27e   :  { %v1166_v12 = vpop.f32.mrf.mxu0 }
 0x27f   :  { %912 = vst [vmem:[#allocation2 + $0x58] sm:$0xff] %v880_v10  ;;  %v878_v13 = vmax.f32 %v778_v11, 0.0  ;;  %v799_v14 = vadd.f32 %v1166_v12, %v1532_v25 }
 0x280   :  { %v790_v15 = vpop.f32.mrf.mxu0 }
 0x281   :  { %910 = vst [vmem:[#allocation2 + $0x48] sm:$0xff] %v878_v13  ;;  %v883_v17 = vmax.f32 %v799_v14, 0.0  ;;  %v791_v18 = vadd.f32 %v1532_v25, %v790_v15 }
 0x282   :  { %v1167_v19 = vpop.f32.mrf.mxu0 }
 0x283   :  { %915 = vst [vmem:[#allocation2 + $0x70] sm:$0xff] %v883_v17  ;;  %v881_v21 = vmax.f32 %v791_v18, 0.0  ;;  %v802_v22 = vadd.f32 %v1167_v19, %v1532_v25 }
 0x284   :  { %v793_v23 = vpop.f32.mrf.mxu0 }
 0x285   :  { %913 = vst [vmem:[#allocation2 + $0x60] sm:$0xff] %v881_v21  ;;  %v884_v24 = vmax.f32 %v802_v22, 0.0  ;;  %v794_v20 = vadd.f32 %v1532_v25, %v793_v23 }
 0x286   :  { %v1170_v26 = vpop.f32.mrf.mxu0 }
 0x287   :  { %916 = vst [vmem:[#allocation2 + $0x78] sm:$0xff] %v884_v24  ;;  %v882_v27 = vmax.f32 %v794_v20, 0.0  ;;  %v815_v0 = vadd.f32 %v1170_v26, %v1532_v25 }
 0x288   :  { %v806_v7 = vpop.f32.mrf.mxu0 }
 0x289   :  { %914 = vst [vmem:[#allocation2 + $0x68] sm:$0xff] %v882_v27  ;;  %v887_v28 = vmax.f32 %v815_v0, 0.0  ;;  %v807_v29 = vadd.f32 %v1532_v25, %v806_v7 }
 0x28a   :  { %v1171_v30 = vpop.f32.mrf.mxu0 }
 0x28b   :  { %919 = vst [vmem:[#allocation2 + $0x90] sm:$0xff] %v887_v28  ;;  %v885_v31 = vmax.f32 %v807_v29, 0.0  ;;  %v818_v32 = vadd.f32 %v1171_v30, %v1532_v25 }
 0x28c   :  { %v809_v33 = vpop.f32.mrf.mxu0 }
 0x28d   :  { %917 = vst [vmem:[#allocation2 + $0x80] sm:$0xff] %v885_v31  ;;  %v888_v34 = vmax.f32 %v818_v32, 0.0  ;;  %v810_v35 = vadd.f32 %v1532_v25, %v809_v33 }
 0x28e   :  { %v1174_v36 = vpop.f32.mrf.mxu0 }
 0x28f   :  { %920 = vst [vmem:[#allocation2 + $0x98] sm:$0xff] %v888_v34  ;;  %v886_v37 = vmax.f32 %v810_v35, 0.0  ;;  %v831_v16 = vadd.f32 %v1174_v36, %v1532_v25 }
 0x290   :  { %v822_v38 = vpop.f32.mrf.mxu0 }
 0x291   :  { %918 = vst [vmem:[#allocation2 + $0x88] sm:$0xff] %v886_v37  ;;  %v891_v40 = vmax.f32 %v831_v16, 0.0  ;;  %v823_v41 = vadd.f32 %v1532_v25, %v822_v38 }
 0x292   :  { %v1175_v42 = vpop.f32.mrf.mxu0 }
 0x293   :  { %923 = vst [vmem:[#allocation2 + $0xb0] sm:$0xff] %v891_v40  ;;  %v889_v43 = vmax.f32 %v823_v41, 0.0  ;;  %v834_v53 = vadd.f32 %v1175_v42, %v1532_v25 }
 0x294   :  { %v825_v44 = vpop.f32.mrf.mxu0 }
 0x295   :  { %921 = vst [vmem:[#allocation2 + $0xa0] sm:$0xff] %v889_v43  ;;  %v892_v45 = vmax.f32 %v834_v53, 0.0  ;;  %v826_v46 = vadd.f32 %v1532_v25, %v825_v44 }
 0x296   :  { %v1178_v47 = vpop.f32.mrf.mxu0 }
 0x297   :  { %924 = vst [vmem:[#allocation2 + $0xb8] sm:$0xff] %v892_v45  ;;  %v890_v48 = vmax.f32 %v826_v46, 0.0  ;;  %v847_v49 = vadd.f32 %v1178_v47, %v1532_v25 }
 0x298   :  { %v838_v39 = vpop.f32.mrf.mxu0 }
 0x299   :  { %922 = vst [vmem:[#allocation2 + $0xa8] sm:$0xff] %v890_v48  ;;  %v895_v50 = vmax.f32 %v847_v49, 0.0  ;;  %v839_v2 = vadd.f32 %v1532_v25, %v838_v39 }
 0x29a   :  { %v1179_v51 = vpop.f32.mrf.mxu0 }
 0x29b   :  { %927 = vst [vmem:[#allocation2 + $0xd0] sm:$0xff] %v895_v50  ;;  %v893_v52 = vmax.f32 %v839_v2, 0.0  ;;  %v850_v54 = vadd.f32 %v1179_v51, %v1532_v25 }
 0x29c   :  { %v841_v55 = vpop.f32.mrf.mxu0 }
 0x29d   :  { %925 = vst [vmem:[#allocation2 + $0xc0] sm:$0xff] %v893_v52  ;;  %v896_v56 = vmax.f32 %v850_v54, 0.0  ;;  %v842_v57 = vadd.f32 %v1532_v25, %v841_v55 }
 0x29e   :  { %v1182_v58 = vpop.f32.mrf.mxu0 }
 0x29f   :  { %928 = vst [vmem:[#allocation2 + $0xd8] sm:$0xff] %v896_v56  ;;  %v894_v59 = vmax.f32 %v842_v57, 0.0  ;;  %v863_v60 = vadd.f32 %v1182_v58, %v1532_v25 }
 0x2a0   :  { %v854_v61 = vpop.f32.mrf.mxu0 }
 0x2a1   :  { %926 = vst [vmem:[#allocation2 + $0xc8] sm:$0xff] %v894_v59  ;;  %v899_v62 = vmax.f32 %v863_v60, 0.0  ;;  %v855_v63 = vadd.f32 %v1532_v25, %v854_v61 }
 0x2a2   :  { %v1183_v1 = vpop.f32.mrf.mxu0 }
 0x2a3   :  { %931 = vst [vmem:[#allocation2 + $0xf0] sm:$0xff] %v899_v62  ;;  %v897_v4 = vmax.f32 %v855_v63, 0.0  ;;  %v866_v3 = vadd.f32 %v1183_v1, %v1532_v25 }
 0x2a4   :  { %v857_v5 = vpop.f32.mrf.mxu0 }
 0x2a5   :  { %929 = vst [vmem:[#allocation2 + $0xe0] sm:$0xff] %v897_v4  ;;  %v900_v6 = vmax.f32 %v866_v3, 0.0  ;;  %v858_v8 = vadd.f32 %v1532_v25, %v857_v5 }
 0x2a7   :  { %932 = vst [vmem:[#allocation2 + $0xf8] sm:$0xff] %v900_v6  ;;  %v898_v9 = vmax.f32 %v858_v8, 0.0 }
 0x2a9   :  { %930 = vst [vmem:[#allocation2 + $0xe8] sm:$0xff] %v898_v9 }
 0x2aa   :  { %1220 = shalt.err (!%p1217_p4)
}
 0x2ab   :  { %s1232_s8 = smov 128   ;;  %s1233_s9 = smov 8  }
 0x2ac   :  { %944 = dma.vmem_to_hbm [thread:$0]  %s939_s29, 4096, %s1576_s7, [#allocation3], %s1232_s8, %s1232_s8, %s1233_s9  }
 0x2ad   :  { %1229 = dma.done.wait [#allocation3], 4096  }
 0x2ae   :  { %1230 = vsyncadd [#allocation3], 4294963200 }
 0x2af   :  { %948 = vsyncpa [#allocation3], 1 }

</bundles_post_ra>
